<compile_context>
chip_gen: v6e
topology: v6e:2x2x1
jax: 0.10.0
libtpu: 0.0.40
codegen_flags: <defaults>
</compile_context>

<pallas_src>
import jax
import jax.numpy as jnp
from jax.experimental import pallas as pl
from jax.experimental.pallas import tpu as pltpu

HIDDEN = 500
HIDDEN_PAD = 512   # 4 x 128 lanes -> clean MXU tiling; zero padding preserves results


def _round_up(x, m):
    return (x + m - 1) // m * m


def _cdiv(a, b):
    return -(-a // b)


def _mlp_kernel(x_ref, w1_ref, b1_ref, w2_ref, b2_ref, w3_ref, b3_ref, y_ref):
    # Layer 1: tiny contraction (K <= 8), stays f32.
    h1 = jnp.dot(x_ref[...], w1_ref[...],
                 preferred_element_type=jnp.float32) + b1_ref[...]
    h1 = jnp.maximum(h1, 0.0)

    # Layers 2/3: bf16 operands on the MXU with f32 accumulation; bias + relu in
    # f32 (v5e has no bf16 VALU).
    h2 = jnp.dot(h1.astype(jnp.bfloat16), w2_ref[...],
                 preferred_element_type=jnp.float32) + b2_ref[...]
    h2 = jnp.maximum(h2, 0.0)

    # Narrow-N output: last dim == full dxDim (unpadded) -> masked store, but the
    # HBM writeback is only dxDim*4 bytes/row instead of 512.
    y = jnp.dot(h2.astype(jnp.bfloat16), w3_ref[...],
                preferred_element_type=jnp.float32) + b3_ref[...]
    y_ref[...] = y.astype(y_ref.dtype)


def init_params(key, o_dim, u_dim, dx_dim, hidden=HIDDEN):
    """Deterministic PyTorch-Linear-style init (uniform +/- 1/sqrt(fan_in)).

    Weights stored as [in, out] so forward computes x @ W + b."""
    in_dim = o_dim + u_dim
    ks = jax.random.split(key, 6)

    def lin(kw, kb, fan_in, fan_out):
        bound = 1.0 / jnp.sqrt(jnp.float32(fan_in))
        w = jax.random.uniform(kw, (fan_in, fan_out), jnp.float32, -bound, bound)
        b = jax.random.uniform(kb, (1, fan_out), jnp.float32, -bound, bound)
        return w, b

    w1, b1 = lin(ks[0], ks[1], in_dim, hidden)
    w2, b2 = lin(ks[2], ks[3], hidden, hidden)
    w3, b3 = lin(ks[4], ks[5], hidden, dx_dim)
    return {"w1": w1, "b1": b1, "w2": w2, "b2": b2, "w3": w3, "b3": b3}


def prepare_params(p, o_dim, u_dim, dx_dim):
    """Pad hidden 500->512 and the layer-1 contraction dim to 8; cast the big
    weights to bf16.  Zero padding is behavior-preserving: padded x columns meet
    zero W1 rows, padded W1/b1 columns give relu(0)=0, padded W2/W3 rows
    contribute nothing.  The output (dx) dimension is left UNPADDED."""
    H, Hp = HIDDEN, HIDDEN_PAD
    k = o_dim + u_dim
    kp = _round_up(k, 8)

    w1 = jnp.pad(p["w1"], ((0, kp - k), (0, Hp - H)))                  # [kp, 512] f32
    b1 = jnp.pad(p["b1"], ((0, 0), (0, Hp - H)))                       # [1, 512] f32
    w2 = jnp.pad(p["w2"], ((0, Hp - H), (0, Hp - H))).astype(jnp.bfloat16)  # [512,512]
    b2 = jnp.pad(p["b2"], ((0, 0), (0, Hp - H)))                       # [1, 512] f32
    w3 = jnp.pad(p["w3"], ((0, Hp - H), (0, 0))).astype(jnp.bfloat16)  # [512, dx]
    b3 = p["b3"]                                                       # [1, dx] f32

    return {"w1": w1, "b1": b1, "w2": w2, "b2": b2, "w3": w3, "b3": b3}


def nn_dynamics_forward(o, u, pp, dx_dim, *, tile_b=512):
    """Pallas implementation of NNDynamics.forward.

    o: [B, oDim] f32, u: [B, uDim] f32, pp: prepared (padded / bf16) params.
    Returns [B, dxDim] f32.
    """
    B = o.shape[0]
    k = o.shape[1] + u.shape[1]
    kp = pp["w1"].shape[0]
    H = HIDDEN_PAD

    # Layer-1 input: single concatenated (and K-padded) array -> one matmul,
    # one pipelined input stream per grid step.
    x = jnp.concatenate((o, u), axis=1)
    if kp != k:
        x = jnp.pad(x, ((0, 0), (0, kp - k)))

    # Batch tiling: balanced grid with >= 2 steps whenever B > 8 (v7x megacore
    # shards the "parallel" axis across its 2 TensorCores), tiles capped at
    # tile_b rows to amortize the ~0.35 us per-step overhead without blowing
    # the VMEM budget (~5 MiB at tb=512, ~9 MiB at tb=1024).
    b8 = _round_up(B, 8)
    n_steps = max(_cdiv(b8, tile_b), 2 if b8 > 8 else 1)
    tb = _round_up(_cdiv(b8, n_steps), 8)
    b_pad = n_steps * tb
    if b_pad != B:
        x = jnp.pad(x, ((0, b_pad - B), (0, 0)))

    grid = (n_steps,)

    def resident(a):
        # Weights/biases: constant index_map -> DMA'd once, VMEM-resident.
        # (pl.Buffered(1) deliberately omitted; double-buffering ~1 MiB of
        # never-changing weights is negligible vs the VMEM budget.)
        return pl.BlockSpec(a.shape, lambda i: (0, 0))

    flops = 2 * b_pad * (kp * H + H * H + H * dx_dim)
    bytes_accessed = (4 * (x.size + b_pad * dx_dim
                           + pp["w1"].size + pp["b1"].size
                           + pp["b2"].size + pp["b3"].size)
                      + 2 * (pp["w2"].size + pp["w3"].size))

    y_pad = pl.pallas_call(
        _mlp_kernel,
        out_shape=jax.ShapeDtypeStruct((b_pad, dx_dim), jnp.float32),
        grid=grid,
        in_specs=[
            pl.BlockSpec((tb, kp), lambda i: (i, 0)),   # x (pipelined per tile)
            resident(pp["w1"]),
            resident(pp["b1"]),
            resident(pp["w2"]),
            resident(pp["b2"]),
            resident(pp["w3"]),
            resident(pp["b3"]),
        ],
        # Unpadded output block: last dim == full array dim (legal) -> minimal
        # HBM writeback, no wrapper column slice.
        out_specs=pl.BlockSpec((tb, dx_dim), lambda i: (i, 0)),
        compiler_params=pltpu.CompilerParams(
            dimension_semantics=("parallel",),
            vmem_limit_bytes=32 * 1024 * 1024),
        cost_estimate=pl.CostEstimate(flops=int(flops), transcendentals=0,
                                      bytes_accessed=int(bytes_accessed)),
    )(x, pp["w1"], pp["b1"], pp["w2"], pp["b2"], pp["w3"], pp["b3"])

    return y_pad[:B] if b_pad != B else y_pad


def reference_forward(o, u, p):
    x = jnp.concatenate((o, u), axis=1)
    h1 = jnp.maximum(x @ p["w1"] + p["b1"], 0.0)
    h2 = jnp.maximum(h1 @ p["w2"] + p["b2"], 0.0)
    return h2 @ p["w3"] + p["b3"]


if __name__ == "__main__":
    # Small shapes consistent with NNDynamics(xDim=4, uDim=2): oDim=dxDim=xDim=4
    B, X_DIM, U_DIM = 8, 4, 2
    O_DIM, DX_DIM = X_DIM, X_DIM

    key = jax.random.PRNGKey(0)
    k_o, k_u, k_p, k_o2, k_u2 = jax.random.split(key, 5)

    raw_params = init_params(k_p, O_DIM, U_DIM, DX_DIM)
    prepped = prepare_params(raw_params, O_DIM, U_DIM, DX_DIM)

    # Case 1: batch fits in one tile.
    o = jax.random.normal(k_o, (B, O_DIM), jnp.float32)
    u = jax.random.normal(k_u, (B, U_DIM), jnp.float32)
    y = jax.block_until_ready(nn_dynamics_forward(o, u, prepped, DX_DIM))
    y_ref = reference_forward(o, u, raw_params)
    assert y.shape == (B, DX_DIM)
    # Layers 2/3 use bf16 matmul operands (f32 accumulate) -> relaxed tolerance.
    assert jnp.allclose(y, y_ref, atol=2e-2, rtol=2e-2), \
        float(jnp.max(jnp.abs(y - y_ref)))

    # Case 2: non-multiple-of-8 batch -> exercises row padding + a 2-step grid
    # (and the masked narrow-lane output store path).
    B2 = 19
    o2 = jax.random.normal(k_o2, (B2, O_DIM), jnp.float32)
    u2 = jax.random.normal(k_u2, (B2, U_DIM), jnp.float32)
    y2 = jax.block_until_ready(nn_dynamics_forward(o2, u2, prepped, DX_DIM))
    y2_ref = reference_forward(o2, u2, raw_params)
    assert y2.shape == (B2, DX_DIM)
    assert jnp.allclose(y2, y2_ref, atol=2e-2, rtol=2e-2), \
        float(jnp.max(jnp.abs(y2 - y2_ref)))

    print("KERNEL_OK")
</pallas_src>

<mosaic_0001>
module attributes {stable_mosaic.version = 11 : i64} {
  func.func @_mlp_kernel(%arg0: i32, %arg1: memref<8x8xf32, #tpu.memory_space<vmem>>, %arg2: memref<8x512xf32, #tpu.memory_space<vmem>>, %arg3: memref<1x512xf32, #tpu.memory_space<vmem>>, %arg4: memref<512x512xbf16, #tpu.memory_space<vmem>>, %arg5: memref<1x512xf32, #tpu.memory_space<vmem>>, %arg6: memref<512x4xbf16, #tpu.memory_space<vmem>>, %arg7: memref<1x4xf32, #tpu.memory_space<vmem>>, %arg8: memref<8x4xf32, #tpu.memory_space<vmem>>) attributes {dimension_semantics = [#tpu.dimension_semantics<parallel>], iteration_bounds = array<i64: 1>, scalar_prefetch = 0 : i64, scratch_operands = 0 : i64, tpu.core_type = #tpu.core_type<tc>, window_params = [{transform_indices = @transform_0, window_bounds = array<i64: 8, 8>}, {pipeline_mode = #tpu.pipeline_mode<synchronous>, transform_indices = @transform_1, window_bounds = array<i64: 8, 512>}, {pipeline_mode = #tpu.pipeline_mode<synchronous>, transform_indices = @transform_2, window_bounds = array<i64: 1, 512>}, {pipeline_mode = #tpu.pipeline_mode<synchronous>, transform_indices = @transform_3, window_bounds = array<i64: 512, 512>}, {pipeline_mode = #tpu.pipeline_mode<synchronous>, transform_indices = @transform_4, window_bounds = array<i64: 1, 512>}, {pipeline_mode = #tpu.pipeline_mode<synchronous>, transform_indices = @transform_5, window_bounds = array<i64: 512, 4>}, {pipeline_mode = #tpu.pipeline_mode<synchronous>, transform_indices = @transform_6, window_bounds = array<i64: 1, 4>}, {transform_indices = @transform_7, window_bounds = array<i64: 8, 4>}]} {
    %c0 = arith.constant 0 : index
    %c0_0 = arith.constant 0 : index
    %0 = vector.load %arg1[%c0, %c0_0] : memref<8x8xf32, #tpu.memory_space<vmem>>, vector<8x8xf32>
    %c0_1 = arith.constant 0 : index
    %c0_2 = arith.constant 0 : index
    %1 = vector.load %arg2[%c0_1, %c0_2] : memref<8x512xf32, #tpu.memory_space<vmem>>, vector<8x512xf32>
    %cst = arith.constant dense<0.000000e+00> : vector<8x512xf32>
    %2 = tpu.matmul %0, %1, %cst {dimension_numbers = #tpu.dot_dimension_numbers<[1], [0], [0], [1], [0, 0, 1, 1], [], []>} : vector<8x8xf32>, vector<8x512xf32>, vector<8x512xf32> -> vector<8x512xf32>
    %c0_3 = arith.constant 0 : index
    %c0_4 = arith.constant 0 : index
    %3 = vector.load %arg3[%c0_3, %c0_4] : memref<1x512xf32, #tpu.memory_space<vmem>>, vector<1x512xf32>
    %4 = vector.broadcast %3 : vector<1x512xf32> to vector<8x512xf32>
    %5 = arith.addf %2, %4 : vector<8x512xf32>
    %cst_5 = arith.constant 0.000000e+00 : f32
    %6 = vector.broadcast %cst_5 : f32 to vector<8x512xf32>
    %7 = arith.maximumf %5, %6 : vector<8x512xf32>
    %8 = arith.truncf %7 : vector<8x512xf32> to vector<8x512xbf16>
    %c0_6 = arith.constant 0 : index
    %c0_7 = arith.constant 0 : index
    %9 = vector.load %arg4[%c0_6, %c0_7] : memref<512x512xbf16, #tpu.memory_space<vmem>>, vector<512x512xbf16>
    %cst_8 = arith.constant dense<0.000000e+00> : vector<8x512xf32>
    %10 = tpu.matmul %8, %9, %cst_8 {dimension_numbers = #tpu.dot_dimension_numbers<[1], [0], [0], [1], [0, 0, 1, 1], [], []>} : vector<8x512xbf16>, vector<512x512xbf16>, vector<8x512xf32> -> vector<8x512xf32>
    %c0_9 = arith.constant 0 : index
    %c0_10 = arith.constant 0 : index
    %11 = vector.load %arg5[%c0_9, %c0_10] : memref<1x512xf32, #tpu.memory_space<vmem>>, vector<1x512xf32>
    %12 = vector.broadcast %11 : vector<1x512xf32> to vector<8x512xf32>
    %13 = arith.addf %10, %12 : vector<8x512xf32>
    %cst_11 = arith.constant 0.000000e+00 : f32
    %14 = vector.broadcast %cst_11 : f32 to vector<8x512xf32>
    %15 = arith.maximumf %13, %14 : vector<8x512xf32>
    %16 = arith.truncf %15 : vector<8x512xf32> to vector<8x512xbf16>
    %c0_12 = arith.constant 0 : index
    %c0_13 = arith.constant 0 : index
    %17 = vector.load %arg6[%c0_12, %c0_13] : memref<512x4xbf16, #tpu.memory_space<vmem>>, vector<512x4xbf16>
    %cst_14 = arith.constant dense<0.000000e+00> : vector<8x4xf32>
    %18 = tpu.matmul %16, %17, %cst_14 {dimension_numbers = #tpu.dot_dimension_numbers<[1], [0], [0], [1], [0, 0, 1, 1], [], []>} : vector<8x512xbf16>, vector<512x4xbf16>, vector<8x4xf32> -> vector<8x4xf32>
    %c0_15 = arith.constant 0 : index
    %c0_16 = arith.constant 0 : index
    %19 = vector.load %arg7[%c0_15, %c0_16] : memref<1x4xf32, #tpu.memory_space<vmem>>, vector<1x4xf32>
    %20 = vector.broadcast %19 : vector<1x4xf32> to vector<8x4xf32>
    %21 = arith.addf %18, %20 : vector<8x4xf32>
    %c0_17 = arith.constant 0 : index
    %c0_18 = arith.constant 0 : index
    %22 = vector.load %arg8[%c0_17, %c0_18] : memref<8x4xf32, #tpu.memory_space<vmem>>, vector<8x4xf32>
    tpu.vector_store %arg8[%c0_17, %c0_18], %21 {strides = array<i32>} : memref<8x4xf32, #tpu.memory_space<vmem>>, vector<8x4xf32>,
    return
  }
  func.func @transform_0(%arg0: i32) -> (i32, i32) {
    %c0_i32 = arith.constant 0 : i32
    %c0_i32_0 = arith.constant 0 : i32
    return %arg0, %c0_i32 : i32, i32
  }
  func.func @transform_1(%arg0: i32) -> (i32, i32) {
    %c0_i32 = arith.constant 0 : i32
    %c0_i32_0 = arith.constant 0 : i32
    %c0_i32_1 = arith.constant 0 : i32
    return %c0_i32, %c0_i32_0 : i32, i32
  }
  func.func @transform_2(%arg0: i32) -> (i32, i32) {
    %c0_i32 = arith.constant 0 : i32
    %c0_i32_0 = arith.constant 0 : i32
    %c0_i32_1 = arith.constant 0 : i32
    return %c0_i32, %c0_i32_0 : i32, i32
  }
  func.func @transform_3(%arg0: i32) -> (i32, i32) {
    %c0_i32 = arith.constant 0 : i32
    %c0_i32_0 = arith.constant 0 : i32
    %c0_i32_1 = arith.constant 0 : i32
    return %c0_i32, %c0_i32_0 : i32, i32
  }
  func.func @transform_4(%arg0: i32) -> (i32, i32) {
    %c0_i32 = arith.constant 0 : i32
    %c0_i32_0 = arith.constant 0 : i32
    %c0_i32_1 = arith.constant 0 : i32
    return %c0_i32, %c0_i32_0 : i32, i32
  }
  func.func @transform_5(%arg0: i32) -> (i32, i32) {
    %c0_i32 = arith.constant 0 : i32
    %c0_i32_0 = arith.constant 0 : i32
    %c0_i32_1 = arith.constant 0 : i32
    return %c0_i32, %c0_i32_0 : i32, i32
  }
  func.func @transform_6(%arg0: i32) -> (i32, i32) {
    %c0_i32 = arith.constant 0 : i32
    %c0_i32_0 = arith.constant 0 : i32
    %c0_i32_1 = arith.constant 0 : i32
    return %c0_i32, %c0_i32_0 : i32, i32
  }
  func.func @transform_7(%arg0: i32) -> (i32, i32) {
    %c0_i32 = arith.constant 0 : i32
    %c0_i32_0 = arith.constant 0 : i32
    return %arg0, %c0_i32 : i32, i32
  }
}

</mosaic_0001>

<bundles_post_ra>
// kernel: tpu_custom_call.1
= control target key start
LH: loop header
LB: loop body
LE: loop exit
PB: predicated region body
PF: predicated region fallthrough
CT: control target
= control target key end

     0   :  { %12 = vsyncpa [#allocation3], 0  ;;  %s1991_s24 = smov [#allocation2]   ;;  %s2191_s0 = inlined_call_operand.vmem [shape: f32[8,8], index: 0, kind: input, shape index: {}]   ;;  %s2192_s1 = inlined_call_operand.vmem [shape: f32[8,512], index: 1, kind: input, shape index: {}]   ;;  %s2193_s2 = inlined_call_operand.vmem [shape: f32[1,512], index: 2, kind: input, shape index: {}]   ;;  %s2194_s3 = inlined_call_operand.hbm [shape: bf16[512,512], index: 3, kind: input, shape index: {}]   ;;  %s2195_s4 = inlined_call_operand.vmem [shape: f32[1,512], index: 4, kind: input, shape index: {}]   ;;  %s2196_s5 = inlined_call_operand.vmem [shape: bf16[512,4], index: 5, kind: input, shape index: {}]   ;;  %s2197_s6 = inlined_call_operand.vmem [shape: f32[1,4], index: 6, kind: input, shape index: {}]   ;;  %s2198_s7 = inlined_call_operand.vmem [shape: f32[8,4], index: 7, kind: output, shape index: {}]  }
   0x1   :  { %s24_s25 = sshll.u32 %s1991_s24, 4  ;;  %s25_s25 = int_to_ptr.vmem [resolvable:$true] %s24_s25 }
   0x2   :  { %s1977_s26 = scalar_lea.vmem %s25_s25, 16384  ;;  %p1982_p1 = scmp.lt.s32.totalorder %s25_s25, %s25_s25 }
   0x3   :  { %p1978_p0 = scmp.ne.s32.totalorder %s25_s25, %s1977_s26  ;;  %p1983_p2 = scmp.lt.s32.totalorder %s1977_s26, %s1977_s26 }
   0x5   :  { %p1984_p3 = por %p1983_p2, %p1982_p1 }
   0x7   :  { %p1985_p4 = pnand %p1984_p3, %p1978_p0 }
   0x9   :  { %1988 = shalt.err (!%p1985_p4)
}
   0xa   :  { %s1992_s27 = smov 256   ;;  %s1993_s28 = smov 16  }
   0xb   :  { %30 = dma.hbm_to_vmem [thread:$0]  %s2194_s3, 16384, %s25_s25, [#allocation3], %s1992_s27, %s1992_s27, %s1993_s28  }
   0xc   :  { %1989 = dma.done.wait [#allocation3], 16384  }
   0xd   :  { %1990 = vsyncadd [#allocation3], 4294950912  ;;  %v1994_v0 = vmov 0.0   ;;  %v43_v1 = vld [vmem:[%s2192_s1 + $0x8] sm:$0xff]  ;;  %v45_v2 = vld [vmem:[%s2192_s1 + $0x18] sm:$0xff]  ;;  %vm68_vm0 = vcmask 64512  }
   0xe   :  { %136 = vmatprep.mubr.f32.mxu0 %v1994_v0  ;;  %207 = vmatprep.mubr.f32.mxu1 %v1994_v0  ;;  %v42_v3 = vld [vmem:[%s2192_s1] sm:$0xff]  ;;  %v44_v4 = vld [vmem:[%s2192_s1 + $0x10] sm:$0xff]  ;;  %vm1527_vm1 = vcmask 31744  }
   0xf   :  { %102 = vmatprep.subr.mxu0 %v43_v1  ;;  %173 = vmatprep.subr.mxu1 %v45_v2  ;;  %v41_v5 = vld [vmem:[%s2191_s0] sm:$0xff] }
  0x10   :  { %103 = vmatpush1.msra.mxu0 %v42_v3  ;;  %174 = vmatpush1.msra.mxu1 %v44_v4  ;;  %v1745_v6 = vld [vmem:[#allocation2 + $0xe0] ss:$16 sps:$4 sm:$0xff]   ;;  %v1747_v7 = vld [vmem:[#allocation2 + $0xe4] ss:$16 sps:$4 sm:$0xff]  }
  0x11   :  { %1534 = vmatmul.mubr.msk.f32.vlgmr.msra.gmra.mxu0 %vm68_vm0, %v41_v5  ;;  %1535 = vmatmul.mubr.msk.f32.vlgmr.msra.gmra.mxu1 %vm68_vm0, %v41_v5  ;;  %v1748_v8 = vld [vmem:[#allocation2 + $0x2e0] ss:$16 sps:$4 sm:$0xff]   ;;  %v1750_v9 = vld [vmem:[#allocation2 + $0x2e4] ss:$16 sps:$4 sm:$0xff]  }
  0x12   :  { %1012 = vmatprep.subr.bf16.mxu0 %v1747_v7  ;;  %v1751_v10 = vld [vmem:[#allocation2 + $0xc0] ss:$16 sps:$4 sm:$0xff]   ;;  %v1753_v11 = vld [vmem:[#allocation2 + $0xc4] ss:$16 sps:$4 sm:$0xff]   ;;  %1053 = vmatprep.subr.bf16.mxu1 %v1750_v9  ;;  %v1846_v7 = vld [vmem:[#allocation2 + $0x2ec] ss:$16 sps:$4 sm:$0xff]  }
  0x13   :  { %1013 = vmatpush1.bf16.msra.mxu0 %v1745_v6  ;;  %v1756_v12 = vld [vmem:[#allocation2 + $0x2c4] ss:$16 sps:$4 sm:$0xff]   ;;  %1054 = vmatpush1.bf16.msra.mxu1 %v1748_v8  ;;  %v1754_v13 = vld [vmem:[#allocation2 + $0x2c0] ss:$16 sps:$4 sm:$0xff]   ;;  %v1843_v6 = vld [vmem:[#allocation2 + $0xec] ss:$16 sps:$4 sm:$0xff]   ;;  %v48_v8 = vlaneseq }
  0x14   :  { %1014 = vmatprep.subr.bf16.mxu0 %v1753_v11  ;;  %1055 = vmatprep.subr.bf16.mxu1 %v1756_v12  ;;  %v1759_v14 = vld [vmem:[#allocation2 + $0xa4] ss:$16 sps:$4 sm:$0xff]   ;;  %v1757_v15 = vld [vmem:[#allocation2 + $0xa0] ss:$16 sps:$4 sm:$0xff]  }
  0x15   :  { %v1762_v16 = vld [vmem:[#allocation2 + $0x2a4] ss:$16 sps:$4 sm:$0xff]   ;;  %v1760_v18 = vld [vmem:[#allocation2 + $0x2a0] ss:$16 sps:$4 sm:$0xff]   ;;  %v2053_v9 = vshrl.u32 %v48_v8, 7 }
  0x16   :  { %v1765_v17 = vld [vmem:[#allocation2 + $0x84] ss:$16 sps:$4 sm:$0xff]   ;;  %v1763_v20 = vld [vmem:[#allocation2 + $0x80] ss:$16 sps:$4 sm:$0xff]   ;;  %v1898_v8 = vld [vmem:[#allocation2 + $0x3c8] ss:$16 sps:$4 sm:$0xff]  }
  0x17   :  { %1015 = vmatpush1.bf16.msra.mxu0 %v1751_v10  ;;  %1056 = vmatpush1.bf16.msra.mxu1 %v1754_v13  ;;  %v1768_v19 = vld [vmem:[#allocation2 + $0x284] ss:$16 sps:$4 sm:$0xff]   ;;  %v1766_v22 = vld [vmem:[#allocation2 + $0x280] ss:$16 sps:$4 sm:$0xff]   ;;  %v50_v10 = vsub.s32 0, %v2053_v9  ;;  %v58_v11 = vsub.s32 2, %v2053_v9 }
  0x18   :  { %1016 = vmatprep.subr.bf16.mxu0 %v1759_v14  ;;  %1057 = vmatprep.subr.bf16.mxu1 %v1762_v16  ;;  %v1771_v21 = vld [vmem:[#allocation2 + $0x64] ss:$16 sps:$4 sm:$0xff]   ;;  %v1769_v24 = vld [vmem:[#allocation2 + $0x60] ss:$16 sps:$4 sm:$0xff]   ;;  %v54_v13 = vsub.s32 1, %v2053_v9  ;;  %v62_v14 = vsub.s32 3, %v2053_v9 }
  0x19   :  { %v1774_v23 = vld [vmem:[#allocation2 + $0x264] ss:$16 sps:$4 sm:$0xff]   ;;  %v1772_v26 = vld [vmem:[#allocation2 + $0x260] ss:$16 sps:$4 sm:$0xff]  }
  0x1a   :  { %v1777_v25 = vld [vmem:[#allocation2 + $0x44] ss:$16 sps:$4 sm:$0xff]   ;;  %v1775_v28 = vld [vmem:[#allocation2 + $0x40] ss:$16 sps:$4 sm:$0xff]  }
  0x1b   :  { %1017 = vmatpush1.bf16.msra.mxu0 %v1757_v15  ;;  %1058 = vmatpush1.bf16.msra.mxu1 %v1760_v18  ;;  %v1780_v27 = vld [vmem:[#allocation2 + $0x244] ss:$16 sps:$4 sm:$0xff]   ;;  %v1778_v30 = vld [vmem:[#allocation2 + $0x240] ss:$16 sps:$4 sm:$0xff]  }
  0x1c   :  { %1018 = vmatprep.subr.bf16.mxu0 %v1765_v17  ;;  %1059 = vmatprep.subr.bf16.mxu1 %v1768_v19  ;;  %v1783_v29 = vld [vmem:[#allocation2 + $0x24] ss:$16 sps:$4 sm:$0xff]   ;;  %v1781_v32 = vld [vmem:[#allocation2 + $0x20] ss:$16 sps:$4 sm:$0xff]  }
  0x1d   :  { %v1786_v31 = vld [vmem:[#allocation2 + $0x224] ss:$16 sps:$4 sm:$0xff]   ;;  %v1784_v34 = vld [vmem:[#allocation2 + $0x220] ss:$16 sps:$4 sm:$0xff]  }
  0x1e   :  { %v1789_v33 = vld [vmem:[#allocation2 + $0x4] ss:$16 sps:$4 sm:$0xff]   ;;  %v1787_v36 = vld [vmem:[#allocation2] ss:$16 sps:$4 sm:$0xff]  }
  0x1f   :  { %1019 = vmatpush1.bf16.msra.mxu0 %v1763_v20  ;;  %1060 = vmatpush1.bf16.msra.mxu1 %v1766_v22  ;;  %v1792_v35 = vld [vmem:[#allocation2 + $0x204] ss:$16 sps:$4 sm:$0xff]   ;;  %v1790_v38 = vld [vmem:[#allocation2 + $0x200] ss:$16 sps:$4 sm:$0xff]  }
  0x20   :  { %1020 = vmatprep.subr.bf16.mxu0 %v1771_v21  ;;  %1061 = vmatprep.subr.bf16.mxu1 %v1774_v23  ;;  %v1795_v37 = vld [vmem:[#allocation2 + $0x1e4] ss:$16 sps:$4 sm:$0xff]   ;;  %v1793_v40 = vld [vmem:[#allocation2 + $0x1e0] ss:$16 sps:$4 sm:$0xff]  }
  0x21   :  { %v1798_v39 = vld [vmem:[#allocation2 + $0x3e4] ss:$16 sps:$4 sm:$0xff]   ;;  %v1796_v42 = vld [vmem:[#allocation2 + $0x3e0] ss:$16 sps:$4 sm:$0xff]  }
  0x22   :  { %v1801_v41 = vld [vmem:[#allocation2 + $0x1c4] ss:$16 sps:$4 sm:$0xff]   ;;  %v1799_v44 = vld [vmem:[#allocation2 + $0x1c0] ss:$16 sps:$4 sm:$0xff]  }
  0x23   :  { %1021 = vmatpush1.bf16.msra.mxu0 %v1769_v24  ;;  %1062 = vmatpush1.bf16.msra.mxu1 %v1772_v26  ;;  %v1804_v43 = vld [vmem:[#allocation2 + $0x3c4] ss:$16 sps:$4 sm:$0xff]   ;;  %v1802_v45 = vld [vmem:[#allocation2 + $0x3c0] ss:$16 sps:$4 sm:$0xff]  }
  0x24   :  { %1022 = vmatprep.subr.bf16.mxu0 %v1777_v25  ;;  %1063 = vmatprep.subr.bf16.mxu1 %v1780_v27  ;;  %v1807_v46 = vld [vmem:[#allocation2 + $0x1a4] ss:$16 sps:$4 sm:$0xff]   ;;  %v1805_v47 = vld [vmem:[#allocation2 + $0x1a0] ss:$16 sps:$4 sm:$0xff]  }
  0x25   :  { %v1810_v48 = vld [vmem:[#allocation2 + $0x3a4] ss:$16 sps:$4 sm:$0xff]   ;;  %v1808_v50 = vld [vmem:[#allocation2 + $0x3a0] ss:$16 sps:$4 sm:$0xff]  }
  0x26   :  { %v1813_v49 = vld [vmem:[#allocation2 + $0x184] ss:$16 sps:$4 sm:$0xff]   ;;  %v1811_v52 = vld [vmem:[#allocation2 + $0x180] ss:$16 sps:$4 sm:$0xff]  }
  0x27   :  { %1023 = vmatpush1.bf16.msra.mxu0 %v1775_v28  ;;  %1064 = vmatpush1.bf16.msra.mxu1 %v1778_v30  ;;  %v1816_v51 = vld [vmem:[#allocation2 + $0x384] ss:$16 sps:$4 sm:$0xff]   ;;  %v1814_v54 = vld [vmem:[#allocation2 + $0x380] ss:$16 sps:$4 sm:$0xff]  }
  0x28   :  { %1024 = vmatprep.subr.bf16.mxu0 %v1783_v29  ;;  %1065 = vmatprep.subr.bf16.mxu1 %v1786_v31  ;;  %v1819_v53 = vld [vmem:[#allocation2 + $0x164] ss:$16 sps:$4 sm:$0xff]   ;;  %v1817_v56 = vld [vmem:[#allocation2 + $0x160] ss:$16 sps:$4 sm:$0xff]  }
  0x29   :  { %v1822_v55 = vld [vmem:[#allocation2 + $0x364] ss:$16 sps:$4 sm:$0xff]   ;;  %v1820_v58 = vld [vmem:[#allocation2 + $0x360] ss:$16 sps:$4 sm:$0xff]  }
  0x2a   :  { %v1825_v57 = vld [vmem:[#allocation2 + $0x144] ss:$16 sps:$4 sm:$0xff]   ;;  %v1823_v60 = vld [vmem:[#allocation2 + $0x140] ss:$16 sps:$4 sm:$0xff]  }
  0x2b   :  { %1025 = vmatpush1.bf16.msra.mxu0 %v1781_v32  ;;  %1066 = vmatpush1.bf16.msra.mxu1 %v1784_v34  ;;  %v1828_v59 = vld [vmem:[#allocation2 + $0x344] ss:$16 sps:$4 sm:$0xff]   ;;  %v1826_v61 = vld [vmem:[#allocation2 + $0x340] ss:$16 sps:$4 sm:$0xff]   ;;  %v1841_v34 = vld [vmem:[#allocation2 + $0xe8] ss:$16 sps:$4 sm:$0xff]  }
  0x2c   :  { %1026 = vmatprep.subr.bf16.mxu0 %v1789_v33  ;;  %1067 = vmatprep.subr.bf16.mxu1 %v1792_v35  ;;  %v1831_v62 = vld [vmem:[#allocation2 + $0x124] ss:$16 sps:$4 sm:$0xff]   ;;  %v1829_v0 = vld [vmem:[#allocation2 + $0x120] ss:$16 sps:$4 sm:$0xff]   ;;  %v1844_v35 = vld [vmem:[#allocation2 + $0x2e8] ss:$16 sps:$4 sm:$0xff]  }
  0x2d   :  { %v1834_v63 = vld [vmem:[#allocation2 + $0x324] ss:$16 sps:$4 sm:$0xff]   ;;  %v1832_v1 = vld [vmem:[#allocation2 + $0x320] ss:$16 sps:$4 sm:$0xff]  }
  0x2e   :  { %v1837_v2 = vld [vmem:[#allocation2 + $0x104] ss:$16 sps:$4 sm:$0xff]   ;;  %v1835_v4 = vld [vmem:[#allocation2 + $0x100] ss:$16 sps:$4 sm:$0xff]  }
  0x2f   :  { %1027 = vmatpush1.bf16.msra.mxu0 %v1787_v36  ;;  %1068 = vmatpush1.bf16.msra.mxu1 %v1790_v38  ;;  %v1840_v3 = vld [vmem:[#allocation2 + $0x304] ss:$16 sps:$4 sm:$0xff]   ;;  %v1838_v5 = vld [vmem:[#allocation2 + $0x300] ss:$16 sps:$4 sm:$0xff]   ;;  %v1852_v38 = vld [vmem:[#allocation2 + $0x2cc] ss:$16 sps:$4 sm:$0xff]  }
  0x30   :  { %1028 = vmatprep.subr.bf16.mxu0 %v1795_v37  ;;  %1069 = vmatprep.subr.bf16.mxu1 %v1798_v39  ;;  %v46_v12 = vld [vmem:[%s2193_s2] sm:$0xf]  ;;  %v1849_v37 = vld [vmem:[#allocation2 + $0xcc] ss:$16 sps:$4 sm:$0xff]   ;;  %v1847_v39 = vld [vmem:[#allocation2 + $0xc8] ss:$16 sps:$4 sm:$0xff]  }
  0x31   :  { %v51_v15 = vrot.slane %v46_v12, %v50_v10  ;;  %v59_v16 = vrot.slane %v46_v12, %v58_v11  ;;  %v55_v17 = vrot.slane %v46_v12, %v54_v13  ;;  %v63_v18 = vrot.slane %v46_v12, %v62_v14  ;;  %v1903_v12 = vld [vmem:[#allocation2 + $0x1ac] ss:$16 sps:$4 sm:$0xff]  }
  0x33   :  { %1029 = vmatpush2.bf16.msra.mxu0 %v1793_v40  ;;  %1070 = vmatpush2.bf16.msra.mxu1 %v1796_v42  ;;  %v1850_v40 = vld [vmem:[#allocation2 + $0x2c8] ss:$16 sps:$4 sm:$0xff]   ;;  %v1858_v42 = vld [vmem:[#allocation2 + $0x2ac] ss:$16 sps:$4 sm:$0xff]  }
  0x34   :  { %1030 = vmatprep.subr.bf16.mxu0 %v1801_v41  ;;  %1071 = vmatprep.subr.bf16.mxu1 %v1804_v43  ;;  %v1855_v41 = vld [vmem:[#allocation2 + $0xac] ss:$16 sps:$4 sm:$0xff]   ;;  %v1853_v43 = vld [vmem:[#allocation2 + $0xa8] ss:$16 sps:$4 sm:$0xff]  }
  0x37   :  { %1031 = vmatpush2.bf16.msra.mxu0 %v1799_v44  ;;  %1072 = vmatpush2.bf16.msra.mxu1 %v1802_v45  ;;  %v1856_v44 = vld [vmem:[#allocation2 + $0x2a8] ss:$16 sps:$4 sm:$0xff]   ;;  %v1861_v45 = vld [vmem:[#allocation2 + $0x8c] ss:$16 sps:$4 sm:$0xff]  }
  0x38   :  { %1032 = vmatprep.subr.bf16.mxu0 %v1807_v46  ;;  %1073 = vmatprep.subr.bf16.mxu1 %v1810_v48  ;;  %v1864_v46 = vld [vmem:[#allocation2 + $0x28c] ss:$16 sps:$4 sm:$0xff]   ;;  %v1862_v48 = vld [vmem:[#allocation2 + $0x288] ss:$16 sps:$4 sm:$0xff]  }
  0x3b   :  { %1033 = vmatpush2.bf16.msra.mxu0 %v1805_v47  ;;  %1074 = vmatpush2.bf16.msra.mxu1 %v1808_v50  ;;  %v1859_v47 = vld [vmem:[#allocation2 + $0x88] ss:$16 sps:$4 sm:$0xff]   ;;  %v1870_v50 = vld [vmem:[#allocation2 + $0x26c] ss:$16 sps:$4 sm:$0xff]  }
  0x3c   :  { %1034 = vmatprep.subr.bf16.mxu0 %v1813_v49  ;;  %1075 = vmatprep.subr.bf16.mxu1 %v1816_v51  ;;  %v1867_v49 = vld [vmem:[#allocation2 + $0x6c] ss:$16 sps:$4 sm:$0xff]   ;;  %v1865_v51 = vld [vmem:[#allocation2 + $0x68] ss:$16 sps:$4 sm:$0xff]  }
  0x3f   :  { %1035 = vmatpush2.bf16.msra.mxu0 %v1811_v52  ;;  %1076 = vmatpush2.bf16.msra.mxu1 %v1814_v54  ;;  %v1868_v52 = vld [vmem:[#allocation2 + $0x268] ss:$16 sps:$4 sm:$0xff]   ;;  %v1876_v54 = vld [vmem:[#allocation2 + $0x24c] ss:$16 sps:$4 sm:$0xff]  }
  0x40   :  { %1036 = vmatprep.subr.bf16.mxu0 %v1819_v53  ;;  %1077 = vmatprep.subr.bf16.mxu1 %v1822_v55  ;;  %v1873_v53 = vld [vmem:[#allocation2 + $0x4c] ss:$16 sps:$4 sm:$0xff]   ;;  %v1871_v55 = vld [vmem:[#allocation2 + $0x48] ss:$16 sps:$4 sm:$0xff]  }
  0x43   :  { %1037 = vmatpush2.bf16.msra.mxu0 %v1817_v56  ;;  %1078 = vmatpush2.bf16.msra.mxu1 %v1820_v58  ;;  %v1874_v56 = vld [vmem:[#allocation2 + $0x248] ss:$16 sps:$4 sm:$0xff]   ;;  %v1882_v58 = vld [vmem:[#allocation2 + $0x22c] ss:$16 sps:$4 sm:$0xff]  }
  0x44   :  { %1038 = vmatprep.subr.bf16.mxu0 %v1825_v57  ;;  %1079 = vmatprep.subr.bf16.mxu1 %v1828_v59  ;;  %v1879_v57 = vld [vmem:[#allocation2 + $0x2c] ss:$16 sps:$4 sm:$0xff]   ;;  %v1877_v59 = vld [vmem:[#allocation2 + $0x28] ss:$16 sps:$4 sm:$0xff]  }
  0x47   :  { %1039 = vmatpush2.bf16.msra.mxu0 %v1823_v60  ;;  %1080 = vmatpush2.bf16.msra.mxu1 %v1826_v61  ;;  %v1880_v60 = vld [vmem:[#allocation2 + $0x228] ss:$16 sps:$4 sm:$0xff]   ;;  %v1885_v61 = vld [vmem:[#allocation2 + $0xc] ss:$16 sps:$4 sm:$0xff]  }
  0x48   :  { %1040 = vmatprep.subr.bf16.mxu0 %v1831_v62  ;;  %1081 = vmatprep.subr.bf16.mxu1 %v1834_v63  ;;  %v1888_v62 = vld [vmem:[#allocation2 + $0x20c] ss:$16 sps:$4 sm:$0xff]   ;;  %v1883_v63 = vld [vmem:[#allocation2 + $0x8] ss:$16 sps:$4 sm:$0xff]  }
  0x4b   :  { %1041 = vmatpush2.bf16.msra.mxu0 %v1829_v0  ;;  %1082 = vmatpush2.bf16.msra.mxu1 %v1832_v1  ;;  %v1886_v0 = vld [vmem:[#allocation2 + $0x208] ss:$16 sps:$4 sm:$0xff]   ;;  %v1891_v1 = vld [vmem:[#allocation2 + $0x1ec] ss:$16 sps:$4 sm:$0xff]  }
  0x4c   :  { %1042 = vmatprep.subr.bf16.mxu0 %v1837_v2  ;;  %1083 = vmatprep.subr.bf16.mxu1 %v1840_v3  ;;  %v1894_v2 = vld [vmem:[#allocation2 + $0x3ec] ss:$16 sps:$4 sm:$0xff]   ;;  %v1889_v3 = vld [vmem:[#allocation2 + $0x1e8] ss:$16 sps:$4 sm:$0xff]  }
  0x4f   :  { %1043 = vmatpush2.bf16.msra.mxu0 %v1835_v4  ;;  %1084 = vmatpush2.bf16.msra.mxu1 %v1838_v5  ;;  %v1892_v4 = vld [vmem:[#allocation2 + $0x3e8] ss:$16 sps:$4 sm:$0xff]   ;;  %v1897_v5 = vld [vmem:[#allocation2 + $0x1cc] ss:$16 sps:$4 sm:$0xff]  }
  0x50   :  { %1094 = vmatprep.subr.bf16.mxu0 %v1843_v6  ;;  %1135 = vmatprep.subr.bf16.mxu1 %v1846_v7  ;;  %v1900_v6 = vld [vmem:[#allocation2 + $0x3cc] ss:$16 sps:$4 sm:$0xff]   ;;  %v1895_v7 = vld [vmem:[#allocation2 + $0x1c8] ss:$16 sps:$4 sm:$0xff]  }
  0xd1   :  { %v138_v19 = vpop.f32.mrf.mxu0  ;;  %v209_v20 = vpop.f32.mrf.mxu1 }
  0xd2   :  { %v139_v21 = vadd.f32 %v138_v19, %v51_v15  ;;  %v210_v22 = vadd.f32 %v209_v20, %v59_v16  ;;  %v1906_v15 = vld [vmem:[#allocation2 + $0x3ac] ss:$16 sps:$4 sm:$0xff]   ;;  %v1901_v16 = vld [vmem:[#allocation2 + $0x1a8] ss:$16 sps:$4 sm:$0xff]  }
  0xd3   :  { %v140_v23 = vpop.f32.mrf.mxu0  ;;  %v211_v24 = vpop.f32.mrf.mxu1  ;;  %v1912_v19 = vld [vmem:[#allocation2 + $0x38c] ss:$16 sps:$4 sm:$0xff]   ;;  %v1907_v20 = vld [vmem:[#allocation2 + $0x188] ss:$16 sps:$4 sm:$0xff]  }
  0xd4   :  { %v216_v25 = vmax.f32 %v210_v22, 0.0  ;;  %v141_v26 = vadd.f32 %v140_v23, %v55_v17  ;;  %v212_v27 = vadd.f32 %v211_v24, %v63_v18  ;;  %v214_v28 = vmax.f32 %v139_v21, 0.0  ;;  %v1904_v17 = vld [vmem:[#allocation2 + $0x3a8] ss:$16 sps:$4 sm:$0xff]   ;;  %v1909_v18 = vld [vmem:[#allocation2 + $0x18c] ss:$16 sps:$4 sm:$0xff]  }
  0xd5   :  { %v1910_v21 = vld [vmem:[#allocation2 + $0x388] ss:$16 sps:$4 sm:$0xff]   ;;  %v1915_v22 = vld [vmem:[#allocation2 + $0x16c] ss:$16 sps:$4 sm:$0xff]  }
  0xd6   :  { %v215_v29 = vmax.f32 %v141_v26, 0.0  ;;  %v217_v30 = vmax.f32 %v212_v27, 0.0  ;;  %v2070_v31 = vpack.c.bf16 %v216_v25, %v216_v25  ;;  %v2072_v36 = vpack.c.bf16 %v214_v28, %v214_v28  ;;  %v1918_v23 = vld [vmem:[#allocation2 + $0x36c] ss:$16 sps:$4 sm:$0xff]   ;;  %v1913_v24 = vld [vmem:[#allocation2 + $0x168] ss:$16 sps:$4 sm:$0xff]  }
  0xd7   :  { %v1916_v25 = vld [vmem:[#allocation2 + $0x368] ss:$16 sps:$4 sm:$0xff]   ;;  %v1921_v26 = vld [vmem:[#allocation2 + $0x14c] ss:$16 sps:$4 sm:$0xff]  }
  0xd8   :  { %v219_v32 = vpack.c.bf16 %v215_v29, %v215_v29  ;;  %v221_v33 = vpack.c.bf16 %v217_v30, %v217_v30  ;;  %v1924_v27 = vld [vmem:[#allocation2 + $0x34c] ss:$16 sps:$4 sm:$0xff]   ;;  %v1919_v28 = vld [vmem:[#allocation2 + $0x148] ss:$16 sps:$4 sm:$0xff]  }
  0xd9   :  { %v1922_v29 = vld [vmem:[#allocation2 + $0x348] ss:$16 sps:$4 sm:$0xff]   ;;  %v1927_v30 = vld [vmem:[#allocation2 + $0x12c] ss:$16 sps:$4 sm:$0xff]  }
  0xda   :  { %1044 = vmatprep.mubr.bf16.mxu0 %v219_v32  ;;  %1085 = vmatprep.mubr.bf16.mxu1 %v221_v33 }
  0xdb   :  { %1045 = vmatmul.mubr.bf16.vlgmr.msra.gmra.mxu0 %v2072_v36  ;;  %1086 = vmatmul.mubr.bf16.vlgmr.msra.gmra.mxu1 %v2070_v31 }
  0xdc   :  { %1095 = vmatpush1.bf16.msra.mxu0 %v1841_v34  ;;  %1136 = vmatpush1.bf16.msra.mxu1 %v1844_v35  ;;  %v1928_v34 = vld [vmem:[#allocation2 + $0x328] ss:$16 sps:$4 sm:$0xff]   ;;  %v1933_v35 = vld [vmem:[#allocation2 + $0x10c] ss:$16 sps:$4 sm:$0xff]  }
  0xdd   :  { %1126 = vmatprep.mubr.bf16.mxu0 %v219_v32  ;;  %1167 = vmatprep.mubr.bf16.mxu1 %v221_v33  ;;  %v1930_v32 = vld [vmem:[#allocation2 + $0x32c] ss:$16 sps:$4 sm:$0xff]   ;;  %v1925_v33 = vld [vmem:[#allocation2 + $0x128] ss:$16 sps:$4 sm:$0xff]  }
  0xde   :  { %1096 = vmatprep.subr.bf16.mxu0 %v1849_v37  ;;  %1137 = vmatprep.subr.bf16.mxu1 %v1852_v38  ;;  %v1936_v37 = vld [vmem:[#allocation2 + $0x30c] ss:$16 sps:$4 sm:$0xff]   ;;  %v1931_v38 = vld [vmem:[#allocation2 + $0x108] ss:$16 sps:$4 sm:$0xff]  }
  0xe0   :  { %1097 = vmatpush1.bf16.msra.mxu0 %v1847_v39  ;;  %1138 = vmatpush1.bf16.msra.mxu1 %v1850_v40  ;;  %v1934_v39 = vld [vmem:[#allocation2 + $0x308] ss:$16 sps:$4 sm:$0xff]  }
  0xe1   :  { %1098 = vmatprep.subr.bf16.mxu0 %v1855_v41  ;;  %1139 = vmatprep.subr.bf16.mxu1 %v1858_v42  ;;  %v1937_v40 = vld [vmem:[%s2196_s5 + $0x78] sm:$0xff]   ;;  %v1939_v42 = vld [vmem:[%s2196_s5 + $0x70] sm:$0xff]  }
  0xe2   :  { %v1938_v41 = vld [vmem:[%s2196_s5 + $0x38] sm:$0xff]  }
  0xe4   :  { %1099 = vmatpush1.bf16.msra.mxu0 %v1853_v43  ;;  %1140 = vmatpush1.bf16.msra.mxu1 %v1856_v44  ;;  %v1940_v43 = vld [vmem:[%s2196_s5 + $0x30] sm:$0xff]   ;;  %v1941_v44 = vld [vmem:[%s2196_s5 + $0x68] sm:$0xff]  }
  0xe5   :  { %1100 = vmatprep.subr.bf16.mxu0 %v1861_v45  ;;  %1141 = vmatprep.subr.bf16.mxu1 %v1864_v46  ;;  %v1942_v45 = vld [vmem:[%s2196_s5 + $0x28] sm:$0xff]   ;;  %v1945_v46 = vld [vmem:[%s2196_s5 + $0x58] sm:$0xff]  }
  0xe8   :  { %1101 = vmatpush1.bf16.msra.mxu0 %v1859_v47  ;;  %1142 = vmatpush1.bf16.msra.mxu1 %v1862_v48  ;;  %v1953_v47 = vld [vmem:[%s2196_s5 + $0xf8] sm:$0xff]  }
  0xe9   :  { %1102 = vmatprep.subr.bf16.mxu0 %v1867_v49  ;;  %1143 = vmatprep.subr.bf16.mxu1 %v1870_v50  ;;  %v1954_v48 = vld [vmem:[%s2196_s5 + $0xb8] sm:$0xff]   ;;  %v1955_v49 = vld [vmem:[%s2196_s5 + $0xf0] sm:$0xff]  }
  0xea   :  { %v1946_v50 = vld [vmem:[%s2196_s5 + $0x18] sm:$0xff]  }
  0xec   :  { %1103 = vmatpush1.bf16.msra.mxu0 %v1865_v51  ;;  %1144 = vmatpush1.bf16.msra.mxu1 %v1868_v52  ;;  %v1947_v51 = vld [vmem:[%s2196_s5 + $0x50] sm:$0xff]  }
  0xed   :  { %1104 = vmatprep.subr.bf16.mxu0 %v1873_v53  ;;  %1145 = vmatprep.subr.bf16.mxu1 %v1876_v54  ;;  %v1956_v52 = vld [vmem:[%s2196_s5 + $0xb0] sm:$0xff]   ;;  %v1957_v53 = vld [vmem:[%s2196_s5 + $0xe8] sm:$0xff]  }
  0xee   :  { %v1948_v54 = vld [vmem:[%s2196_s5 + $0x10] sm:$0xff]  }
  0xf0   :  { %1105 = vmatpush1.bf16.msra.mxu0 %v1871_v55  ;;  %1146 = vmatpush1.bf16.msra.mxu1 %v1874_v56  ;;  %v1949_v55 = vld [vmem:[%s2196_s5 + $0x48] sm:$0xff]  }
  0xf1   :  { %1106 = vmatprep.subr.bf16.mxu0 %v1879_v57  ;;  %1147 = vmatprep.subr.bf16.mxu1 %v1882_v58  ;;  %v1958_v56 = vld [vmem:[%s2196_s5 + $0xa8] sm:$0xff]   ;;  %v1959_v57 = vld [vmem:[%s2196_s5 + $0xe0] sm:$0xff]  }
  0xf2   :  { %v1950_v58 = vld [vmem:[%s2196_s5 + $0x8] sm:$0xff]  }
  0xf4   :  { %1107 = vmatpush1.bf16.msra.mxu0 %v1877_v59  ;;  %1148 = vmatpush1.bf16.msra.mxu1 %v1880_v60  ;;  %v1951_v59 = vld [vmem:[%s2196_s5 + $0x40] sm:$0xff]  }
  0xf5   :  { %1108 = vmatprep.subr.bf16.mxu0 %v1885_v61  ;;  %1149 = vmatprep.subr.bf16.mxu1 %v1888_v62  ;;  %v1960_v60 = vld [vmem:[%s2196_s5 + $0xa0] sm:$0xff]   ;;  %v1961_v61 = vld [vmem:[%s2196_s5 + $0xd8] sm:$0xff]  }
  0xf6   :  { %v1952_v62 = vld [vmem:[%s2196_s5] sm:$0xff]  }
  0xf8   :  { %1109 = vmatpush1.bf16.msra.mxu0 %v1883_v63  ;;  %1150 = vmatpush1.bf16.msra.mxu1 %v1886_v0  ;;  %v1962_v63 = vld [vmem:[%s2196_s5 + $0x98] sm:$0xff]   ;;  %v1963_v0 = vld [vmem:[%s2196_s5 + $0xd0] sm:$0xff]  }
  0xf9   :  { %1110 = vmatprep.subr.bf16.mxu0 %v1891_v1  ;;  %1151 = vmatprep.subr.bf16.mxu1 %v1894_v2  ;;  %v1964_v1 = vld [vmem:[%s2196_s5 + $0x90] sm:$0xff]   ;;  %v1965_v2 = vld [vmem:[%s2196_s5 + $0xc8] sm:$0xff]  }
  0xfc   :  { %1111 = vmatpush2.bf16.msra.mxu0 %v1889_v3  ;;  %1152 = vmatpush2.bf16.msra.mxu1 %v1892_v4  ;;  %v1966_v3 = vld [vmem:[%s2196_s5 + $0x88] sm:$0xff]   ;;  %v1967_v4 = vld [vmem:[%s2196_s5 + $0xc0] sm:$0xff]  }
  0xfd   :  { %1112 = vmatprep.subr.bf16.mxu0 %v1897_v5  ;;  %1153 = vmatprep.subr.bf16.mxu1 %v1900_v6  ;;  %v1968_v5 = vld [vmem:[%s2196_s5 + $0x80] sm:$0xff]  }
  0xfe   :  { %v350_v6 = vld [vmem:[%s2195_s4] sm:$0xf] }
 0x100   :  { %1113 = vmatpush2.bf16.msra.mxu0 %v1895_v7  ;;  %1154 = vmatpush2.bf16.msra.mxu1 %v1898_v8  ;;  %v355_v7 = vrot.slane %v350_v6, %v50_v10  ;;  %v359_v8 = vrot.slane %v350_v6, %v54_v13  ;;  %v363_v10 = vrot.slane %v350_v6, %v58_v11 }
 0x101   :  { %1114 = vmatprep.subr.bf16.mxu0 %v1903_v12  ;;  %1155 = vmatprep.subr.bf16.mxu1 %v1906_v15  ;;  %v367_v13 = vrot.slane %v350_v6, %v62_v14 }
 0x104   :  { %1115 = vmatpush2.bf16.msra.mxu0 %v1901_v16  ;;  %1156 = vmatpush2.bf16.msra.mxu1 %v1904_v17 }
 0x105   :  { %1116 = vmatprep.subr.bf16.mxu0 %v1909_v18  ;;  %1157 = vmatprep.subr.bf16.mxu1 %v1912_v19 }
 0x108   :  { %1117 = vmatpush2.bf16.msra.mxu0 %v1907_v20  ;;  %1158 = vmatpush2.bf16.msra.mxu1 %v1910_v21 }
 0x109   :  { %1118 = vmatprep.subr.bf16.mxu0 %v1915_v22  ;;  %1159 = vmatprep.subr.bf16.mxu1 %v1918_v23 }
 0x10c   :  { %1119 = vmatpush2.bf16.msra.mxu0 %v1913_v24  ;;  %1160 = vmatpush2.bf16.msra.mxu1 %v1916_v25 }
 0x10d   :  { %1120 = vmatprep.subr.bf16.mxu0 %v1921_v26  ;;  %1161 = vmatprep.subr.bf16.mxu1 %v1924_v27 }
 0x110   :  { %1121 = vmatpush2.bf16.msra.mxu0 %v1919_v28  ;;  %1162 = vmatpush2.bf16.msra.mxu1 %v1922_v29 }
 0x111   :  { %1122 = vmatprep.subr.bf16.mxu0 %v1927_v30  ;;  %1163 = vmatprep.subr.bf16.mxu1 %v1930_v32 }
 0x114   :  { %1123 = vmatpush2.bf16.msra.mxu0 %v1925_v33  ;;  %1164 = vmatpush2.bf16.msra.mxu1 %v1928_v34 }
 0x115   :  { %1124 = vmatprep.subr.bf16.mxu0 %v1933_v35  ;;  %1165 = vmatprep.subr.bf16.mxu1 %v1936_v37 }
 0x118   :  { %1125 = vmatpush2.bf16.msra.mxu0 %v1931_v38  ;;  %1166 = vmatpush2.bf16.msra.mxu1 %v1934_v39 }
 0x119   :  { %1697 = vmatprep.subr.bf16.mxu0 %v1937_v40  ;;  %1719 = vmatprep.subr.bf16.mxu1 %v1953_v47 }
 0x11b   :  { %1127 = vmatmul.mubr.bf16.vlgmr.msra.gmra.mxu0 %v2072_v36  ;;  %1168 = vmatmul.mubr.bf16.vlgmr.msra.gmra.mxu1 %v2070_v31  ;;  %v1943_v31 = vld [vmem:[%s2196_s5 + $0x60] sm:$0xff]  }
 0x11c   :  { %1698 = vmatpush3.bf16.msra.mxu0 %v1938_v41  ;;  %v1944_v36 = vld [vmem:[%s2196_s5 + $0x20] sm:$0xff]   ;;  %1720 = vmatpush3.bf16.msra.mxu1 %v1954_v48 }
 0x11d   :  { %1699 = vmatprep.subr.bf16.mxu0 %v1939_v42  ;;  %1721 = vmatprep.subr.bf16.mxu1 %v1955_v49  ;;  %v1664_v48 = vld [vmem:[%s2197_s6] ss:$0 sm:$0xff] }
 0x120   :  { %1700 = vmatpush3.bf16.msra.mxu0 %v1940_v43  ;;  %1722 = vmatpush3.bf16.msra.mxu1 %v1956_v52 }
 0x121   :  { %1701 = vmatprep.subr.bf16.mxu0 %v1941_v44  ;;  %1723 = vmatprep.subr.bf16.mxu1 %v1957_v53 }
 0x124   :  { %1702 = vmatpush3.bf16.msra.mxu0 %v1942_v45  ;;  %1724 = vmatpush3.bf16.msra.mxu1 %v1958_v56 }
 0x125   :  { %1703 = vmatprep.subr.bf16.mxu0 %v1943_v31  ;;  %1725 = vmatprep.subr.bf16.mxu1 %v1959_v57 }
 0x128   :  { %1704 = vmatpush3.bf16.msra.mxu0 %v1944_v36  ;;  %1726 = vmatpush3.bf16.msra.mxu1 %v1960_v60 }
 0x129   :  { %1705 = vmatprep.subr.bf16.mxu0 %v1945_v46  ;;  %1727 = vmatprep.subr.bf16.mxu1 %v1961_v61 }
 0x12c   :  { %1706 = vmatpush3.bf16.msra.mxu0 %v1946_v50  ;;  %1728 = vmatpush3.bf16.msra.mxu1 %v1962_v63 }
 0x12d   :  { %1707 = vmatprep.subr.bf16.mxu0 %v1947_v51  ;;  %1729 = vmatprep.subr.bf16.mxu1 %v1963_v0 }
 0x130   :  { %1708 = vmatpush3.bf16.msra.mxu0 %v1948_v54  ;;  %1730 = vmatpush3.bf16.msra.mxu1 %v1964_v1 }
 0x131   :  { %1709 = vmatprep.subr.bf16.mxu0 %v1949_v55  ;;  %1731 = vmatprep.subr.bf16.mxu1 %v1965_v2 }
 0x134   :  { %1710 = vmatpush3.bf16.msra.mxu0 %v1950_v58  ;;  %1732 = vmatpush3.bf16.msra.mxu1 %v1966_v3 }
 0x135   :  { %1711 = vmatprep.subr.bf16.mxu0 %v1951_v59  ;;  %1733 = vmatprep.subr.bf16.mxu1 %v1967_v4 }
 0x138   :  { %1712 = vmatpush3.bf16.msra.mxu0 %v1952_v62  ;;  %1734 = vmatpush3.bf16.msra.mxu1 %v1968_v5 }
 0x19b   :  { %v1046_v12 = vpop.f32.mrf.mxu0  ;;  %v1087_v15 = vpop.f32.mrf.mxu1 }
 0x19c   :  { %v1047_v16 = vadd.f32 %v1046_v12, %v355_v7 }
 0x19d   :  { %v1048_v17 = vpop.f32.mrf.mxu0  ;;  %v1089_v18 = vpop.f32.mrf.mxu1 }
 0x19e   :  { %v1088_v19 = vadd.f32 %v1087_v15, %v1047_v16  ;;  %v1049_v20 = vadd.f32 %v1048_v17, %v359_v8 }
 0x19f   :  { %v1050_v21 = vpop.f32.mrf.mxu0  ;;  %v1091_v22 = vpop.f32.mrf.mxu1 }
 0x1a0   :  { %v1090_v23 = vadd.f32 %v1089_v18, %v1049_v20  ;;  %v1176_v24 = vmax.f32 %v1088_v19, 0.0 }
 0x1a1   :  { %v1051_v25 = vpop.f32.mrf.mxu0  ;;  %v1092_v26 = vpop.f32.mrf.mxu1 }
 0x1a2   :  { %v1177_v27 = vmax.f32 %v1090_v23, 0.0  ;;  %v1180_v29 = vpack.c.bf16 %v1176_v24, %v1176_v24 }
 0x1a4   :  { %v1181_v28 = vpack.c.bf16 %v1177_v27, %v1177_v27 }
 0x1a6   :  { %1479 = vmatprep.mubr.bf16.mxu0 %v1181_v28 }
 0x1a7   :  { %1480 = vmatmul.mubr.bf16.vlgmr.msra.gmra.mxu0 %v1180_v29 }
 0x1db   :  { %v1128_v30 = vpop.f32.mrf.mxu0  ;;  %v1169_v32 = vpop.f32.mrf.mxu1 }
 0x1dc   :  { %v1129_v33 = vadd.f32 %v1128_v30, %v363_v10 }
 0x1dd   :  { %v1130_v34 = vpop.f32.mrf.mxu0  ;;  %v1171_v35 = vpop.f32.mrf.mxu1 }
 0x1de   :  { %v1170_v37 = vadd.f32 %v1169_v32, %v1129_v33  ;;  %v1131_v38 = vadd.f32 %v1130_v34, %v367_v13 }
 0x1df   :  { %v1132_v39 = vpop.f32.mrf.mxu0  ;;  %v1173_v40 = vpop.f32.mrf.mxu1 }
 0x1e0   :  { %v1172_v41 = vadd.f32 %v1171_v35, %v1131_v38  ;;  %v1178_v42 = vmax.f32 %v1170_v37, 0.0 }
 0x1e1   :  { %v1133_v43 = vpop.f32.mrf.mxu0  ;;  %v1174_v44 = vpop.f32.mrf.mxu1 }
 0x1e2   :  { %v1179_v45 = vmax.f32 %v1172_v41, 0.0  ;;  %v1182_v36 = vpack.c.bf16 %v1178_v42, %v1178_v42 }
 0x1e4   :  { %v1183_v31 = vpack.c.bf16 %v1179_v45, %v1179_v45 }
 0x1e6   :  { %1519 = vmatprep.mubr.bf16.mxu1 %v1183_v31 }
 0x1e7   :  { %1520 = vmatmul.mubr.bf16.vlgmr.msra.gmra.mxu1 %v1182_v36 }
 0x267   :  { %v1713_v9 = vpop.f32.mrf.mxu0 }
 0x269   :  { %v1714_v11 = vpop.f32.mrf.mxu0 }
 0x26a   :  { %v1715_v47 = vadd.f32 %v1714_v11, %v1713_v9 }
 0x26b   :  { %v1716_v14 = vpop.f32.mrf.mxu0 }
 0x26c   :  { %v1482_v51 = vadd.f32 %v1715_v47, %v1664_v48 }
 0x26d   :  { %v1717_v46 = vpop.f32.mrf.mxu0 }
 0x2a7   :  { %v1735_v49 = vpop.f32.mrf.mxu1 }
 0x2a9   :  { %v1736_v50 = vpop.f32.mrf.mxu1 }
 0x2aa   :  { %v1737_v52 = vadd.f32 %v1736_v50, %v1735_v49 }
 0x2ab   :  { %v1738_v53 = vpop.f32.mrf.mxu1 }
 0x2ac   :  { %v1522_v54 = vadd.f32 %v1737_v52, %v1482_v51 }
 0x2ad   :  { %v1739_v55 = vpop.f32.mrf.mxu1 }
 0x2ae   :  { %1528 = vst.msk [vmem:[%s2198_s7] sm:$0xff] %vm1527_vm1, %v1522_v54 }
 0x2af   :  { %1533 = vsyncpa [#allocation3], 1 }

</bundles_post_ra>
